<compile_context>
chip_gen: v7x
topology: tpu7x:2x2x1
jax: 0.10.0
libtpu: 0.0.40
codegen_flags: <defaults>
</compile_context>

<pallas_src>
import functools

import jax
import jax.numpy as jnp
from jax.experimental import pallas as pl
from jax.experimental.pallas import tpu as pltpu


def _round_up(x, m):
    return ((x + m - 1) // m) * m


# ----------------------------------------------------------------------------
# Pre-kernel:  XW = features @ W.T   (small GEMM, bf16 output, lane-padded)
# ----------------------------------------------------------------------------
def _xw_kernel(feat_ref, wt_ref, xw_ref):
    xw_ref[...] = jnp.dot(
        feat_ref[...], wt_ref[...], preferred_element_type=jnp.float32
    ).astype(xw_ref.dtype)


# ----------------------------------------------------------------------------
# Main kernel:  out = adj @ XW + b
#   grid axis 0 -> output row tiles   ("parallel", shards across TCs on v7x)
#   grid axis 1 -> reduction over adjacency columns ("arbitrary", last)
# The f32 output block stays VMEM-resident across axis 1 and doubles as the
# accumulator; XW is fully resident and sliced per k-step inside the kernel.
# ----------------------------------------------------------------------------
def _gcn_agg_kernel(nnz_ref, adj_ref, xw_ref, b_ref, out_ref):
    i = pl.program_id(0)
    k = pl.program_id(1)
    tk = adj_ref.shape[1]

    @pl.when(k == 0)
    def _init():
        out_ref[...] = jnp.zeros_like(out_ref)

    # Skip MXU work for all-zero adjacency blocks (clustered / real-graph
    # sparsity). DMA of the (zero) adj tile still happens — see TODO above.
    @pl.when(nnz_ref[i, k] != 0)
    def _accumulate():
        start = pl.multiple_of(k * tk, tk)
        xw_blk = xw_ref[pl.ds(start, tk), :]
        out_ref[...] += jnp.dot(
            adj_ref[...], xw_blk, preferred_element_type=jnp.float32
        )

    @pl.when(k == pl.num_programs(1) - 1)
    def _finalize():
        out_ref[...] += b_ref[...]


@functools.partial(jax.jit, static_argnames=("tm", "tk"))
def sparse_gcn_conv(adj, features, weight, bias, *, tm=256, tk=512):
    """out = (adj @ features) @ weight.T + bias  (GCN layer forward)."""
    n = adj.shape[0]
    f_in = features.shape[1]
    f_out = weight.shape[0]

    assert tm % 8 == 0 and tk % 128 == 0, "tm must be 8-aligned, tk 128-aligned"

    # ---- padding: even grid division + lane-dense output columns -----------
    rpad = _round_up(n, tm)            # adj rows / output rows
    cpad = _round_up(n, tk)            # adj cols / XW rows
    f_out_pad = _round_up(f_out, 128)  # lane-dense output

    adj_p = jnp.pad(adj, ((0, rpad - n), (0, cpad - n)))
    feat_p = jnp.pad(features, ((0, cpad - n), (0, 0)))
    wt_p = jnp.pad(weight.T, ((0, 0), (0, f_out_pad - f_out)))          # (F_in, Fo_p)
    b_p = jnp.pad(bias, (0, f_out_pad - f_out)).reshape(1, f_out_pad)   # (1, Fo_p)

    # bf16 streams, f32 accumulation (halves HBM bytes, MXU-native on all gens).
    adj_bf16 = adj_p.astype(jnp.bfloat16)

    # Per-(row-tile, col-tile) occupancy table for block skipping (lives in SMEM).
    n_i, n_k = rpad // tm, cpad // tk
    block_nnz = (
        (adj_p != 0.0).reshape(n_i, tm, n_k, tk).sum(axis=(1, 3)).astype(jnp.int32)
    )

    # ---------------- pre-kernel: XW = features @ W.T (bf16, padded) --------
    xw = pl.pallas_call(
        _xw_kernel,
        out_shape=jax.ShapeDtypeStruct((cpad, f_out_pad), jnp.bfloat16),
        grid_spec=pltpu.PrefetchScalarGridSpec(
            num_scalar_prefetch=0,
            grid=(n_k,),
            in_specs=[
                pl.BlockSpec((tk, f_in), lambda r: (r, 0)),
                pl.BlockSpec((f_in, f_out_pad), lambda r: (0, 0)),
            ],
            out_specs=pl.BlockSpec((tk, f_out_pad), lambda r: (r, 0)),
        ),
        compiler_params=pltpu.CompilerParams(
            dimension_semantics=("parallel",),
        ),
    )(feat_p, wt_p)

    # ---------------- aggregation kernel: out = adj @ XW + b ----------------
    # NOTE: XW is fully VMEM-resident (cpad * f_out_pad * 2 bytes). For very
    # large N on v7x (64 MiB VMEM) cap residency / fall back to streaming XW.
    out = pl.pallas_call(
        _gcn_agg_kernel,
        out_shape=jax.ShapeDtypeStruct((rpad, f_out_pad), jnp.float32),
        grid_spec=pltpu.PrefetchScalarGridSpec(
            num_scalar_prefetch=1,                 # block_nnz -> SMEM
            grid=(n_i, n_k),
            in_specs=[
                pl.BlockSpec((tm, tk), lambda i, k, nnz: (i, k)),           # adj tile
                pl.BlockSpec((cpad, f_out_pad), lambda i, k, nnz: (0, 0)),  # XW resident
                pl.BlockSpec((1, f_out_pad), lambda i, k, nnz: (0, 0)),     # bias resident
            ],
            out_specs=pl.BlockSpec((tm, f_out_pad), lambda i, k, nnz: (i, 0)),
        ),
        compiler_params=pltpu.CompilerParams(
            dimension_semantics=("parallel", "arbitrary"),
            vmem_limit_bytes=48 * 1024 * 1024,
        ),
    )(block_nnz, adj_bf16, xw, b_p)

    return out[:n, :f_out].astype(features.dtype)


if __name__ == "__main__":
    # Small deterministic problem: N nodes, F_in -> F_out GCN layer.
    N, F_IN, F_OUT = 256, 128, 64
    # Small tiles for the tiny demo (keeps 2x2 grid: exercises megacore axis,
    # the k-reduction, and the empty-block skip). Real sizes: defaults 256/512.
    TM, TK = 128, 128

    key = jax.random.PRNGKey(0)
    k_adj, k_mask, k_feat, k_w, k_b = jax.random.split(key, 5)

    # Clustered-sparse adjacency: two disconnected 128-node communities with
    # ~20% intra-community density -> the off-diagonal 128x128 blocks are
    # exactly zero, so the scalar-prefetched block-skip path is exercised.
    row = jnp.arange(N)[:, None]
    col = jnp.arange(N)[None, :]
    same_comm = (row // 128) == (col // 128)
    adj_vals = jax.random.uniform(k_adj, (N, N), dtype=jnp.float32)
    rand_mask = jax.random.uniform(k_mask, (N, N)) < 0.2
    adj = jnp.where(same_comm & rand_mask, adj_vals, 0.0).astype(jnp.float32)

    features = jax.random.normal(k_feat, (N, F_IN), dtype=jnp.float32)

    # nn.Linear(in_feats, out_feats): weight (F_out, F_in), bias (F_out,)
    bound = 1.0 / jnp.sqrt(jnp.float32(F_IN))
    weight = jax.random.uniform(
        k_w, (F_OUT, F_IN), minval=-bound, maxval=bound, dtype=jnp.float32
    )
    bias = jax.random.uniform(
        k_b, (F_OUT,), minval=-bound, maxval=bound, dtype=jnp.float32
    )

    out = sparse_gcn_conv(adj, features, weight, bias, tm=TM, tk=TK)
    out = jax.block_until_ready(out)
    assert out.shape == (N, F_OUT)

    # Reference 1: same math path (reassociated, bf16 operands, f32 accum) —
    # only fp accumulation order differs, so this check is tight.
    xw_ref = jnp.dot(features, weight.T).astype(jnp.bfloat16)
    ref_bf16 = (
        jnp.dot(adj.astype(jnp.bfloat16), xw_ref, preferred_element_type=jnp.float32)
        + bias
    )
    assert jnp.allclose(out, ref_bf16, atol=2e-2, rtol=2e-2), "mismatch vs bf16-path ref"

    # Reference 2: original PyTorch semantics in full f32 (bf16-stream tolerance).
    ref_f32 = (adj @ features) @ weight.T + bias
    assert jnp.allclose(out, ref_f32, atol=2e-1, rtol=2e-1), "mismatch vs f32 reference"

    print("KERNEL_OK")
</pallas_src>

<mosaic_0001>
module attributes {stable_mosaic.version = 11 : i64} {
  func.func @_xw_kernel(%arg0: i32, %arg1: memref<128x128xf32, #tpu.memory_space<vmem>>, %arg2: memref<128x128xf32, #tpu.memory_space<vmem>>, %arg3: memref<128x128xbf16, #tpu.memory_space<vmem>>) attributes {dimension_semantics = [#tpu.dimension_semantics<parallel>], iteration_bounds = array<i64: 2>, scalar_prefetch = 0 : i64, scratch_operands = 0 : i64, tpu.core_type = #tpu.core_type<tc>, window_params = [{transform_indices = @transform_0, window_bounds = array<i64: 128, 128>}, {pipeline_mode = #tpu.pipeline_mode<synchronous>, transform_indices = @transform_1, window_bounds = array<i64: 128, 128>}, {transform_indices = @transform_2, window_bounds = array<i64: 128, 128>}]} {
    %c0 = arith.constant 0 : index
    %c0_0 = arith.constant 0 : index
    %0 = vector.load %arg1[%c0, %c0_0] : memref<128x128xf32, #tpu.memory_space<vmem>>, vector<128x128xf32>
    %c0_1 = arith.constant 0 : index
    %c0_2 = arith.constant 0 : index
    %1 = vector.load %arg2[%c0_1, %c0_2] : memref<128x128xf32, #tpu.memory_space<vmem>>, vector<128x128xf32>
    %cst = arith.constant dense<0.000000e+00> : vector<128x128xf32>
    %2 = tpu.matmul %0, %1, %cst {dimension_numbers = #tpu.dot_dimension_numbers<[1], [0], [0], [1], [0, 0, 1, 1], [], []>} : vector<128x128xf32>, vector<128x128xf32>, vector<128x128xf32> -> vector<128x128xf32>
    %3 = arith.truncf %2 : vector<128x128xf32> to vector<128x128xbf16>
    %c0_3 = arith.constant 0 : index
    %c0_4 = arith.constant 0 : index
    %4 = vector.load %arg3[%c0_3, %c0_4] : memref<128x128xbf16, #tpu.memory_space<vmem>>, vector<128x128xbf16>
    tpu.vector_store %arg3[%c0_3, %c0_4], %3 {strides = array<i32>} : memref<128x128xbf16, #tpu.memory_space<vmem>>, vector<128x128xbf16>,
    return
  }
  func.func @transform_0(%arg0: i32) -> (i32, i32) {
    %c0_i32 = arith.constant 0 : i32
    %c0_i32_0 = arith.constant 0 : i32
    return %arg0, %c0_i32 : i32, i32
  }
  func.func @transform_1(%arg0: i32) -> (i32, i32) {
    %c0_i32 = arith.constant 0 : i32
    %c0_i32_0 = arith.constant 0 : i32
    %c0_i32_1 = arith.constant 0 : i32
    return %c0_i32, %c0_i32_0 : i32, i32
  }
  func.func @transform_2(%arg0: i32) -> (i32, i32) {
    %c0_i32 = arith.constant 0 : i32
    %c0_i32_0 = arith.constant 0 : i32
    return %arg0, %c0_i32 : i32, i32
  }
}

module attributes {stable_mosaic.version = 11 : i64} {
  func.func @_gcn_agg_kernel(%arg0: i32, %arg1: i32, %arg2: memref<2x2xi32, #tpu.memory_space<smem>>, %arg3: memref<128x128xbf16, #tpu.memory_space<vmem>>, %arg4: memref<256x128xbf16, #tpu.memory_space<vmem>>, %arg5: memref<1x128xf32, #tpu.memory_space<vmem>>, %arg6: memref<128x128xf32, #tpu.memory_space<vmem>>) attributes {dimension_semantics = [#tpu.dimension_semantics<parallel>, #tpu.dimension_semantics<arbitrary>], iteration_bounds = array<i64: 2, 2>, scalar_prefetch = 1 : i64, scratch_operands = 0 : i64, tpu.core_type = #tpu.core_type<tc>, window_params = [{transform_indices = @transform_0, window_bounds = array<i64: 128, 128>}, {pipeline_mode = #tpu.pipeline_mode<synchronous>, transform_indices = @transform_1, window_bounds = array<i64: 256, 128>}, {pipeline_mode = #tpu.pipeline_mode<synchronous>, transform_indices = @transform_2, window_bounds = array<i64: 1, 128>}, {transform_indices = @transform_3, window_bounds = array<i64: 128, 128>}]} {
    %c0_i32 = arith.constant 0 : i32
    %0 = arith.cmpi eq, %arg1, %c0_i32 : i32
    %1 = arith.extui %0 : i1 to i32
    %c0_i32_0 = arith.constant 0 : i32
    %2 = arith.cmpi ne, %1, %c0_i32_0 : i32
    scf.if %2 {
      %cst = arith.constant 0.000000e+00 : f32
      %12 = vector.broadcast %cst : f32 to vector<128x128xf32>
      %c0 = arith.constant 0 : index
      %c0_4 = arith.constant 0 : index
      %13 = vector.load %arg6[%c0, %c0_4] : memref<128x128xf32, #tpu.memory_space<vmem>>, vector<128x128xf32>
      tpu.vector_store %arg6[%c0, %c0_4], %12 {strides = array<i32>} : memref<128x128xf32, #tpu.memory_space<vmem>>, vector<128x128xf32>,
    } else {
    }
    %3 = arith.index_cast %arg0 : i32 to index
    %4 = arith.index_cast %arg1 : i32 to index
    %5 = memref.load %arg2[%3, %4] : memref<2x2xi32, #tpu.memory_space<smem>>
    %c0_i32_1 = arith.constant 0 : i32
    %6 = arith.cmpi ne, %5, %c0_i32_1 : i32
    %7 = arith.extui %6 : i1 to i32
    %c0_i32_2 = arith.constant 0 : i32
    %8 = arith.cmpi ne, %7, %c0_i32_2 : i32
    scf.if %8 {
      %c128_i32 = arith.constant 128 : i32
      %12 = arith.muli %arg1, %c128_i32 : i32
      %13 = tpu.assume_multiple %12, 128 : i32
      %14 = arith.index_cast %13 : i32 to index
      %c0 = arith.constant 0 : index
      %15 = vector.load %arg4[%14, %c0] : memref<256x128xbf16, #tpu.memory_space<vmem>>, vector<128x128xbf16>
      %c0_4 = arith.constant 0 : index
      %c0_5 = arith.constant 0 : index
      %16 = vector.load %arg6[%c0_4, %c0_5] : memref<128x128xf32, #tpu.memory_space<vmem>>, vector<128x128xf32>
      %c0_6 = arith.constant 0 : index
      %c0_7 = arith.constant 0 : index
      %17 = vector.load %arg3[%c0_6, %c0_7] : memref<128x128xbf16, #tpu.memory_space<vmem>>, vector<128x128xbf16>
      %cst = arith.constant dense<0.000000e+00> : vector<128x128xf32>
      %18 = tpu.matmul %17, %15, %cst {dimension_numbers = #tpu.dot_dimension_numbers<[1], [0], [0], [1], [0, 0, 1, 1], [], []>} : vector<128x128xbf16>, vector<128x128xbf16>, vector<128x128xf32> -> vector<128x128xf32>
      %19 = arith.addf %16, %18 : vector<128x128xf32>
      %c0_8 = arith.constant 0 : index
      %c0_9 = arith.constant 0 : index
      %20 = vector.load %arg6[%c0_8, %c0_9] : memref<128x128xf32, #tpu.memory_space<vmem>>, vector<128x128xf32>
      tpu.vector_store %arg6[%c0_8, %c0_9], %19 {strides = array<i32>} : memref<128x128xf32, #tpu.memory_space<vmem>>, vector<128x128xf32>,
    } else {
    }
    %c1_i32 = arith.constant 1 : i32
    %9 = arith.cmpi eq, %arg1, %c1_i32 : i32
    %10 = arith.extui %9 : i1 to i32
    %c0_i32_3 = arith.constant 0 : i32
    %11 = arith.cmpi ne, %10, %c0_i32_3 : i32
    scf.if %11 {
      %c0 = arith.constant 0 : index
      %c0_4 = arith.constant 0 : index
      %12 = vector.load %arg6[%c0, %c0_4] : memref<128x128xf32, #tpu.memory_space<vmem>>, vector<128x128xf32>
      %c0_5 = arith.constant 0 : index
      %c0_6 = arith.constant 0 : index
      %13 = vector.load %arg5[%c0_5, %c0_6] : memref<1x128xf32, #tpu.memory_space<vmem>>, vector<1x128xf32>
      %14 = vector.broadcast %13 : vector<1x128xf32> to vector<128x128xf32>
      %15 = arith.addf %12, %14 : vector<128x128xf32>
      %c0_7 = arith.constant 0 : index
      %c0_8 = arith.constant 0 : index
      %16 = vector.load %arg6[%c0_7, %c0_8] : memref<128x128xf32, #tpu.memory_space<vmem>>, vector<128x128xf32>
      tpu.vector_store %arg6[%c0_7, %c0_8], %15 {strides = array<i32>} : memref<128x128xf32, #tpu.memory_space<vmem>>, vector<128x128xf32>,
    } else {
    }
    return
  }
  func.func @transform_0(%arg0: i32, %arg1: i32, %arg2: memref<2x2xi32, #tpu.memory_space<smem>>) -> (i32, i32) {
    %c0_i32 = arith.constant 0 : i32
    return %arg0, %arg1 : i32, i32
  }
  func.func @transform_1(%arg0: i32, %arg1: i32, %arg2: memref<2x2xi32, #tpu.memory_space<smem>>) -> (i32, i32) {
    %c0_i32 = arith.constant 0 : i32
    %c0_i32_0 = arith.constant 0 : i32
    %c0_i32_1 = arith.constant 0 : i32
    return %c0_i32, %c0_i32_0 : i32, i32
  }
  func.func @transform_2(%arg0: i32, %arg1: i32, %arg2: memref<2x2xi32, #tpu.memory_space<smem>>) -> (i32, i32) {
    %c0_i32 = arith.constant 0 : i32
    %c0_i32_0 = arith.constant 0 : i32
    %c0_i32_1 = arith.constant 0 : i32
    return %c0_i32, %c0_i32_0 : i32, i32
  }
  func.func @transform_3(%arg0: i32, %arg1: i32, %arg2: memref<2x2xi32, #tpu.memory_space<smem>>) -> (i32, i32) {
    %c0_i32 = arith.constant 0 : i32
    %c0_i32_0 = arith.constant 0 : i32
    return %arg0, %c0_i32 : i32, i32
  }
}

</mosaic_0001>

<bundles_post_ra>
// kernel: sparse_gcn_conv.2
= control target key start
LH: loop header
LB: loop body
LE: loop exit
PB: predicated region body
PF: predicated region fallthrough
CT: control target
= control target key end

     0   :  { %s717_s9 = smov 0   ;;  %s804_s0 = inlined_call_operand.vmem [shape: f32[256,128], index: 0, kind: input, shape index: {}]   ;;  %s805_s1 = inlined_call_operand.vmem [shape: f32[128,128], index: 1, kind: input, shape index: {}]   ;;  %s806_s2 = inlined_call_operand.vmem [shape: bf16[256,128], index: 2, kind: output, shape index: {}]  }
   0x1 LB: > { %s460_s10 = sadd.s32 4294967295, %s700_s9   ;;  %p464_p0 = scmp.ge.s32.totalorder %s700_s9, 1  ;;  %s700_s9 = sphi %s717_s9, %s12_s9  }
   0x2   : > { %p113_p1 = scmp.lt.s32.totalorder %s700_s9, 3 }
   0x4   : > { %p114_p2 = pnand %p464_p0, %p113_p1 }
   0x5   : > { %v163_v0 = vld [vmem:[%s805_s1] sm:$0xff] (!%p114_p2)  ;;  %v164_v1 = vld [vmem:[%s805_s1 + $0x8] sm:$0xff] (!%p114_p2)  ;;  %v165_v2 = vld [vmem:[%s805_s1 + $0x10] sm:$0xff] (!%p114_p2)  ;;  %s465_s17 = sshll.u32 (!%p114_p2), %s460_s10, 4 }
   0x6   : > { %117 = sbr.rel (%p114_p2) target bundleno = 269 (0x10d), region = 28  ;;  %v638_v3 = vpack.c.bf16 (!%p114_p2), %v164_v1, %v163_v0  ;;  %v166_v4 = vld [vmem:[%s805_s1 + $0x18] sm:$0xff] (!%p114_p2)  ;;  %p136_p3 = scmp.lt.s32.totalorder (!%p114_p2), %s465_s17, 31  ;;  %v167_v6 = vld [vmem:[%s805_s1 + $0x20] sm:$0xff] (!%p114_p2)  ;;  %v168_v7 = vld [vmem:[%s805_s1 + $0x28] sm:$0xff] (!%p114_p2) }
   0x7   : > { %v642_v5 = vpack.c.bf16 (!%p114_p2), %v166_v4, %v165_v2  ;;  %v646_v8 = vpack.c.bf16 (!%p114_p2), %v168_v7, %v167_v6  ;;  %v169_v9 = vld [vmem:[%s805_s1 + $0x30] sm:$0xff] (!%p114_p2)  ;;  %v170_v10 = vld [vmem:[%s805_s1 + $0x38] sm:$0xff] (!%p114_p2)  ;;  %v171_v14 = vld [vmem:[%s805_s1 + $0x40] sm:$0xff] (!%p114_p2) }
   0x8   : > { %639 = vmatprep.subr.bf16.mxu0 (!%p114_p2), %v638_v3  ;;  %670 = vmatprep.subr.bf16.mxu1 (!%p114_p2), %v638_v3  ;;  %v650_v13 = vpack.c.bf16 (!%p114_p2), %v170_v10, %v169_v9  ;;  %v172_v15 = vld [vmem:[%s805_s1 + $0x48] sm:$0xff] (!%p114_p2)  ;;  %v173_v17 = vld [vmem:[%s805_s1 + $0x50] sm:$0xff] (!%p114_p2)  ;;  %v174_v18 = vld [vmem:[%s805_s1 + $0x58] sm:$0xff] (!%p114_p2) }
   0x9   : > { %641 = vmatpush3.bf16.msra.mxu0 (!%p114_p2), %v638_v3  ;;  %678 = vmatpush3.bf16.msra.mxu1 (!%p114_p2), %v638_v3  ;;  %v654_v16 = vpack.c.bf16 (!%p114_p2), %v172_v15, %v171_v14  ;;  %v658_v19 = vpack.c.bf16 (!%p114_p2), %v174_v18, %v173_v17  ;;  %v175_v20 = vld [vmem:[%s805_s1 + $0x60] sm:$0xff] (!%p114_p2)  ;;  %v176_v21 = vld [vmem:[%s805_s1 + $0x68] sm:$0xff] (!%p114_p2)  ;;  %v177_v23 = vld [vmem:[%s805_s1 + $0x70] sm:$0xff] (!%p114_p2) }
   0xa   : > { %643 = vmatprep.subr.bf16.mxu0 (!%p114_p2), %v642_v5  ;;  %671 = vmatprep.subr.bf16.mxu1 (!%p114_p2), %v642_v5  ;;  %v662_v22 = vpack.c.bf16 (!%p114_p2), %v176_v21, %v175_v20  ;;  %v178_v24 = vld [vmem:[%s805_s1 + $0x78] sm:$0xff] (!%p114_p2) }
   0xb   : > { %v666_v25 = vpack.c.bf16 (!%p114_p2), %v178_v24, %v177_v23 }
   0xd   : > { %s808_s17 = smov (!%p136_p3, %s465_s17), 31  ;;  %645 = vmatpush3.bf16.msra.mxu0 %v642_v5  ;;  %679 = vmatpush3.bf16.msra.mxu1 %v642_v5 }
   0xe   : > { %s466_s24 = sshll.u32 %s808_s17, 3  ;;  %647 = vmatprep.subr.bf16.mxu0 %v646_v8  ;;  %672 = vmatprep.subr.bf16.mxu1 %v646_v8  ;;  %s468_s22 = sshll.u32 %s808_s17, 2 }
   0xf   : > { %s755_s3 = scalar_lea.vmem %s804_s0, %s466_s24  ;;  %s145_s25 = scalar_lea.vmem %s806_s2, %s468_s22 }
  0x10   : > { %v147_v11 = vld [vmem:[%s755_s3] sm:$0xff]  ;;  %v148_v26 = vld [vmem:[%s755_s3 + $0x8] sm:$0xff]  ;;  %v149_v28 = vld [vmem:[%s755_s3 + $0x10] sm:$0xff] }
  0x11   : > { %v155_v12 = vld [vmem:[%s755_s3 + $0x40] sm:$0xff]  ;;  %614 = vmatprep.mubr.f32.mxu0 %v147_v11  ;;  %649 = vmatpush3.bf16.msra.mxu0 %v646_v8  ;;  %v156_v27 = vld [vmem:[%s755_s3 + $0x48] sm:$0xff]  ;;  %v157_v29 = vld [vmem:[%s755_s3 + $0x50] sm:$0xff] }
  0x12   : > { %626 = vmatprep.mubr.f32.mxu1 %v155_v12  ;;  %680 = vmatpush3.bf16.msra.mxu1 %v646_v8  ;;  %v150_v30 = vld [vmem:[%s755_s3 + $0x18] sm:$0xff]  ;;  %v151_v32 = vld [vmem:[%s755_s3 + $0x20] sm:$0xff]  ;;  %v152_v34 = vld [vmem:[%s755_s3 + $0x28] sm:$0xff] }
  0x13   : > { %651 = vmatprep.subr.bf16.mxu0 %v650_v13  ;;  %673 = vmatprep.subr.bf16.mxu1 %v650_v13  ;;  %v158_v31 = vld [vmem:[%s755_s3 + $0x58] sm:$0xff]  ;;  %v159_v33 = vld [vmem:[%s755_s3 + $0x60] sm:$0xff]  ;;  %v160_v35 = vld [vmem:[%s755_s3 + $0x68] sm:$0xff] }
  0x14   : > { %v153_v36 = vld [vmem:[%s755_s3 + $0x30] sm:$0xff]  ;;  %v154_v38 = vld [vmem:[%s755_s3 + $0x38] sm:$0xff] }
  0x15   : > { %653 = vmatpush3.bf16.msra.mxu0 %v650_v13  ;;  %v161_v37 = vld [vmem:[%s755_s3 + $0x70] sm:$0xff]  ;;  %v162_v39 = vld [vmem:[%s755_s3 + $0x78] sm:$0xff] }
  0x16   : > { %681 = vmatpush3.bf16.msra.mxu1 %v650_v13  ;;  %655 = vmatprep.subr.bf16.mxu0 %v654_v16 }
  0x17   : > { %674 = vmatprep.subr.bf16.mxu1 %v654_v16 }
  0x19   : > { %657 = vmatpush3.bf16.msra.mxu0 %v654_v16 }
  0x1a   : > { %682 = vmatpush3.bf16.msra.mxu1 %v654_v16  ;;  %659 = vmatprep.subr.bf16.mxu0 %v658_v19 }
  0x1b   : > { %675 = vmatprep.subr.bf16.mxu1 %v658_v19 }
  0x1d   : > { %661 = vmatpush3.bf16.msra.mxu0 %v658_v19 }
  0x1e   : > { %683 = vmatpush3.bf16.msra.mxu1 %v658_v19  ;;  %663 = vmatprep.subr.bf16.mxu0 %v662_v22 }
  0x1f   : > { %676 = vmatprep.subr.bf16.mxu1 %v662_v22 }
  0x21   : > { %665 = vmatpush3.bf16.msra.mxu0 %v662_v22 }
  0x22   : > { %684 = vmatpush3.bf16.msra.mxu1 %v662_v22  ;;  %667 = vmatprep.subr.bf16.mxu0 %v666_v25 }
  0x23   : > { %677 = vmatprep.subr.bf16.mxu1 %v666_v25 }
  0x25   : > { %669 = vmatpush3.bf16.msra.mxu0 %v666_v25 }
  0x26   : > { %685 = vmatpush3.bf16.msra.mxu1 %v666_v25 }
  0x28   : > { %615 = vmatmul.mubr.f32.vlgmr.msra.gmra.mrb[0].mxu0 %v148_v26 }
  0x29   : > { %627 = vmatmul.mubr.f32.vlgmr.msra.gmra.mrb[0].mxu1 %v156_v27  ;;  %617 = vmatprep.mubr.f32.mxu0 %v149_v28 }
  0x2a   : > { %629 = vmatprep.mubr.f32.mxu1 %v157_v29 }
  0x2c   : > { %618 = vmatmul.mubr.f32.gmra.mrb[2].mxu0 %v150_v30 }
  0x2d   : > { %630 = vmatmul.mubr.f32.gmra.mrb[2].mxu1 %v158_v31  ;;  %620 = vmatprep.mubr.f32.mxu0 %v151_v32 }
  0x2e   : > { %632 = vmatprep.mubr.f32.mxu1 %v159_v33 }
  0x30   : > { %621 = vmatmul.mubr.f32.gmra.mrb[4].mxu0 %v152_v34 }
  0x31   : > { %633 = vmatmul.mubr.f32.gmra.mrb[4].mxu1 %v160_v35  ;;  %623 = vmatprep.mubr.f32.mxu0 %v153_v36 }
  0x32   : > { %635 = vmatprep.mubr.f32.mxu1 %v161_v37 }
  0x34   : > { %624 = vmatmul.mubr.f32.gmra.mrb[6].mxu0 %v154_v38 }
  0x35   : > { %636 = vmatmul.mubr.f32.gmra.mrb[6].mxu1 %v162_v39 }
  0xfb   : > { %v616_v40 = vpop.f32.mrb[0].mxu0 }
  0xfc   : > { %v628_v41 = vpop.f32.mrb[0].mxu1  ;;  %v245_v42 = vpop.f32.mrb[1].mxu0 }
  0xfd   : > { %v285_v43 = vpop.f32.mrb[1].mxu1  ;;  %v506_v44 = vpack.c.bf16 %v616_v40, %v245_v42 }
  0xfe   : > { %v526_v45 = vpack.c.bf16 %v628_v41, %v285_v43 }
  0xff   : > { %507 = vst [vmem:[%s145_s25] sm:$0xff] %v506_v44   ;;  %v619_v46 = vpop.f32.mrb[2].mxu0 }
 0x100   : > { %546 = vst [vmem:[%s145_s25 + $0x20] sm:$0xff] %v526_v45   ;;  %v631_v47 = vpop.f32.mrb[2].mxu1  ;;  %v255_v48 = vpop.f32.mrb[3].mxu0 }
 0x101   : > { %v295_v49 = vpop.f32.mrb[3].mxu1  ;;  %v511_v50 = vpack.c.bf16 %v619_v46, %v255_v48 }
 0x102   : > { %v531_v51 = vpack.c.bf16 %v631_v47, %v295_v49 }
 0x103   : > { %543 = vst [vmem:[%s145_s25 + $0x8] sm:$0xff] %v511_v50   ;;  %v622_v52 = vpop.f32.mrb[4].mxu0 }
 0x104   : > { %547 = vst [vmem:[%s145_s25 + $0x28] sm:$0xff] %v531_v51   ;;  %v634_v53 = vpop.f32.mrb[4].mxu1  ;;  %v265_v54 = vpop.f32.mrb[5].mxu0 }
 0x105   : > { %v305_v55 = vpop.f32.mrb[5].mxu1  ;;  %v516_v56 = vpack.c.bf16 %v622_v52, %v265_v54 }
 0x106   : > { %v536_v57 = vpack.c.bf16 %v634_v53, %v305_v55 }
 0x107   : > { %544 = vst [vmem:[%s145_s25 + $0x10] sm:$0xff] %v516_v56   ;;  %v625_v58 = vpop.f32.mrb[6].mxu0 }
 0x108   : > { %548 = vst [vmem:[%s145_s25 + $0x30] sm:$0xff] %v536_v57   ;;  %v637_v59 = vpop.f32.mrb[6].mxu1  ;;  %v275_v60 = vpop.f32.mrb[7].mxu0 }
 0x109   : > { %v315_v61 = vpop.f32.mrb[7].mxu1  ;;  %v521_v62 = vpack.c.bf16 %v625_v58, %v275_v60 }
 0x10a   : > { %v541_v63 = vpack.c.bf16 %v637_v59, %v315_v61 }
 0x10b   : > { %545 = vst [vmem:[%s145_s25 + $0x18] sm:$0xff] %v521_v62  }
 0x10c   : > { %549 = vst [vmem:[%s145_s25 + $0x38] sm:$0xff] %v541_v63  }
 0x10d PF: > { %s12_s9 = sadd.s32 1, %s700_s9  }
 0x10e   : > { %p9_p4 = scmp.ge.s32.totalorder %s12_s9, 4  }
 0x110   :  { %11 = sbr.rel (!%p9_p4) target bundleno = 1 (0x1), region = 58 }

// kernel: sparse_gcn_conv.3
= control target key start
LH: loop header
LB: loop body
LE: loop exit
PB: predicated region body
PF: predicated region fallthrough
CT: control target
= control target key end

     0   :  { %s1242_s0 = inlined_call_operand.vmem [shape: s32[2,2], index: 0, kind: input, shape index: {}]   ;;  %s1243_s1 = inlined_call_operand.vmem [shape: bf16[256,256], index: 1, kind: input, shape index: {}]   ;;  %s1244_s2 = inlined_call_operand.vmem [shape: bf16[256,128], index: 2, kind: input, shape index: {}]   ;;  %s1245_s3 = inlined_call_operand.vmem [shape: f32[1,128], index: 3, kind: input, shape index: {}]   ;;  %s1246_s4 = inlined_call_operand.vmem [shape: f32[256,128], index: 4, kind: output, shape index: {}]  }
   0x1   :  { %s9_s17 = sshll.u32 %s1242_s0, 4  ;;  %s10_s17 = int_to_ptr.vmem [resolvable:$true] %s9_s17 }
   0x2   :  { %s922_s18 = scalar_lea.vmem %s10_s17, 32  ;;  %p927_p1 = scmp.lt.s32.totalorder %s10_s17, %s10_s17 }
   0x3   :  { %p923_p0 = scmp.ne.s32.totalorder %s10_s17, %s922_s18  ;;  %p928_p2 = scmp.lt.s32.totalorder %s922_s18, %s922_s18 }
   0x5   :  { %p929_p3 = por %p928_p2, %p927_p1 }
   0x7   :  { %p930_p4 = pnand %p929_p3, %p923_p0 }
   0x9   :  { %933 = shalt.err (!%p930_p4)  }
   0xa   :  { %s992_s19 = smov [#allocation3]  }
   0xb   :  { %12 = dma.vmem_to_smem %s10_s17, 32, %s992_s19, [#allocation2] }
   0xc   :  { %962 = dma.done.wait [#allocation2], 32 }
   0xd   :  { %963 = vsyncadd [#allocation2], 4294967264 }
   0xe   :  { %14 = sfence }
   0xf   :  { %s1022_s20 = smov 0   ;;  %s1024_s21 = smov 0  }
  0x10   :  { %s1026_s22 = smov 0   ;;  %s1028_s0 = smov 0  }
  0x11   :  { %s1030_s23 = smov 0   ;;  %s1032_s24 = smov 0  }
  0x12   :  { %s1034_s25 = smov 0  }
  0x13 LB: > { %s29_s26 = sadd.s32 1, %s982_s23  ;;  %s32_s27 = sadd.s32 1, %s986_s24  ;;  %s990_s25 = sphi %s1034_s25, %s20_s25   ;;  %s986_s24 = sphi %s1032_s24, %s1252_s24   ;;  %s982_s23 = sphi %s1030_s23, %s1251_s23   ;;  %s978_s0 = sphi %s1028_s0, %s1250_s0   ;;  %s974_s22 = sphi %s1026_s22, %s1249_s22   ;;  %s970_s21 = sphi %s1024_s21, %s1248_s21   ;;  %s966_s20 = sphi %s1022_s20, %s1247_s20  }
  0x14   : > { %p30_p5 = scmp.ge.s32.totalorder %s29_s26, 2  ;;  %p48_p6 = scmp.ne.s32.totalorder %s970_s21, %s966_s20 }
  0x15   : > { %p49_p7 = scmp.eq.s32.totalorder %s990_s25, 0  ;;  %s41_s5 = sadd.s32 1, %s970_s21 }
  0x16   : > { %s1254_s26 = smov (%p30_p5, %s29_s26), 0  ;;  %s1256_s27 = smov (!%p30_p5, %s32_s27), %s986_s24 }
  0x17   : > { %p50_p8 = por %p49_p7, %p48_p6  ;;  %p34_p9 = scmp.ge.s32.totalorder %s1256_s27, 2 }
  0x18   : > { %s37_s28 = ssub.s32 %s982_s23, %s1254_s26  ;;  %p749_p11 = scmp.ge.s32.totalorder %s990_s25, 4 }
  0x19   : > { %s1258_s27 = smov (%p34_p9, %s1256_s27), 0 }
  0x1a   : > { %s36_s29 = ssub.s32 %s986_s24, %s1258_s27  ;;  %148 = sbr.rel (%p749_p11) target bundleno = 49 (0x31), region = 24 }
  0x1b   : > { %s38_s30 = sor.u32 %s37_s28, %s36_s29 }
  0x1c   : > { %p39_p10 = scmp.eq.s32.totalorder %s38_s30, 0 }
  0x1e   : > { %s1073_s6 = scalar_select %p39_p10, %s970_s21, %s41_s5  }
  0x21   : > { %151 = sbr.rel (!%p50_p8) target bundleno = 49 (0x31), region = 28  ;;  %s153_s7 = sand.u32 (%p50_p8), 1, %s970_s21  }
  0x22   : > { %s783_s8 = sshll.u32 (%p50_p8), %s986_s24, 5  ;;  %s750_s9 = sshll.u32 (%p50_p8), %s153_s7, 6 }
  0x23   : > { %s158_s10 = sadd.s32 (%p50_p8), %s982_s23, %s783_s8  ;;  %s155_s15 = scalar_lea.vmem (%p50_p8), [#allocation4], %s750_s9 }
  0x24   : > { %s753_s11 = sshll.u32 (%p50_p8), %s158_s10, 2 }
  0x25   : > { %s1082_s14 = scalar_lea.vmem (%p50_p8), %s1243_s1, %s753_s11 }
  0x26   : > { %v176_v0 = vld [vmem:[%s1082_s14] sm:$0xf] (%p50_p8)  ;;  %v178_v1 = vld [vmem:[%s1082_s14 + $0x8] sm:$0xf] (%p50_p8)  ;;  %v180_v2 = vld [vmem:[%s1082_s14 + $0x10] sm:$0xf] (%p50_p8) }
  0x27   : > { %177 = vst [vmem:[%s155_s15] sm:$0xf] (%p50_p8), %v176_v0  ;;  %179 = vst [vmem:[%s155_s15 + $0x4] sm:$0xf] (%p50_p8), %v178_v1  ;;  %v182_v3 = vld [vmem:[%s1082_s14 + $0x18] sm:$0xf] (%p50_p8) }
  0x28   : > { %181 = vst [vmem:[%s155_s15 + $0x8] sm:$0xf] %v180_v2  ;;  %v184_v4 = vld [vmem:[%s1082_s14 + $0x20] sm:$0xf]  ;;  %v186_v5 = vld [vmem:[%s1082_s14 + $0x28] sm:$0xf] }
  0x29   : > { %183 = vst [vmem:[%s155_s15 + $0xc] sm:$0xf] %v182_v3  ;;  %185 = vst [vmem:[%s155_s15 + $0x10] sm:$0xf] %v184_v4  ;;  %v188_v6 = vld [vmem:[%s1082_s14 + $0x30] sm:$0xf] }
  0x2a   : > { %187 = vst [vmem:[%s155_s15 + $0x14] sm:$0xf] %v186_v5  ;;  %v190_v7 = vld [vmem:[%s1082_s14 + $0x38] sm:$0xf]  ;;  %v192_v8 = vld [vmem:[%s1082_s14 + $0x40] sm:$0xf] }
  0x2b   : > { %189 = vst [vmem:[%s155_s15 + $0x18] sm:$0xf] %v188_v6  ;;  %191 = vst [vmem:[%s155_s15 + $0x1c] sm:$0xf] %v190_v7  ;;  %v194_v9 = vld [vmem:[%s1082_s14 + $0x48] sm:$0xf] }
  0x2c   : > { %193 = vst [vmem:[%s155_s15 + $0x20] sm:$0xf] %v192_v8  ;;  %v196_v10 = vld [vmem:[%s1082_s14 + $0x50] sm:$0xf]  ;;  %v198_v11 = vld [vmem:[%s1082_s14 + $0x58] sm:$0xf] }
  0x2d   : > { %195 = vst [vmem:[%s155_s15 + $0x24] sm:$0xf] %v194_v9  ;;  %197 = vst [vmem:[%s155_s15 + $0x28] sm:$0xf] %v196_v10  ;;  %v200_v12 = vld [vmem:[%s1082_s14 + $0x60] sm:$0xf] }
  0x2e   : > { %199 = vst [vmem:[%s155_s15 + $0x2c] sm:$0xf] %v198_v11  ;;  %v202_v13 = vld [vmem:[%s1082_s14 + $0x68] sm:$0xf]  ;;  %v204_v14 = vld [vmem:[%s1082_s14 + $0x70] sm:$0xf] }
  0x2f   : > { %201 = vst [vmem:[%s155_s15 + $0x30] sm:$0xf] %v200_v12  ;;  %203 = vst [vmem:[%s155_s15 + $0x34] sm:$0xf] %v202_v13  ;;  %v206_v15 = vld [vmem:[%s1082_s14 + $0x78] sm:$0xf] }
  0x30   : > { %205 = vst [vmem:[%s155_s15 + $0x38] sm:$0xf] %v204_v14  ;;  %207 = vst [vmem:[%s155_s15 + $0x3c] sm:$0xf] %v206_v15 }
  0x31 PF: > { %p754_p12 = scmp.ge.s32.totalorder %s990_s25, 1  ;;  %p261_p13 = scmp.lt.s32.totalorder %s990_s25, 5 }
  0x33   : > { %p262_p0 = pnand %p754_p12, %p261_p13 }
  0x34   : > { %s268_s16 = sand.u32 (!%p262_p0), 1, %s966_s20   ;;  %s756_s17 = sshll.u32 (!%p262_p0), %s978_s0, 4 }
  0x35   : > { %265 = sbr.rel (%p262_p0) target bundleno = 358 (0x166), region = 69  ;;  %s755_s18 = sshll.u32 (!%p262_p0), %s268_s16, 6 }
  0x36   : > { %p293_p1 = scmp.lt.s32.totalorder (!%p262_p0), %s756_s17, 31  ;;  %s1109_s5 = scalar_lea.vmem (!%p262_p0), [#allocation4], %s755_s18 }
  0x37   : > { %p758_p2 = scmp.ne.s32.totalorder (!%p262_p0), %s974_s22, 0 }
  0x3c   : > { %s1260_s17 = smov (!%p293_p1, %s756_s17), 31  ;;  %302 = sbr.rel (%p758_p2) target bundleno = 71 (0x47), region = 77 }
  0x3d   : > { %s757_s19 = sshll.u32 %s1260_s17, 3  ;;  %v993_v16 = vmov (!%p758_p2), 0.0  }
  0x3e   : > { %s1107_s30 = scalar_lea.vmem %s1246_s4, %s757_s19 }
  0x3f   : > { %303 = vst [vmem:[%s1107_s30] sm:$0xff] (!%p758_p2), %v993_v16  ;;  %304 = vst [vmem:[%s1107_s30 + $0x8] sm:$0xff] (!%p758_p2), %v993_v16 }
  0x40   : > { %305 = vst [vmem:[%s1107_s30 + $0x10] sm:$0xff] (!%p758_p2), %v993_v16  ;;  %306 = vst [vmem:[%s1107_s30 + $0x18] sm:$0xff] (!%p758_p2), %v993_v16 }
  0x41   : > { %307 = vst [vmem:[%s1107_s30 + $0x20] sm:$0xff] (!%p758_p2), %v993_v16  ;;  %308 = vst [vmem:[%s1107_s30 + $0x28] sm:$0xff] (!%p758_p2), %v993_v16 }
  0x42   : > { %309 = vst [vmem:[%s1107_s30 + $0x30] sm:$0xff] (!%p758_p2), %v993_v16  ;;  %310 = vst [vmem:[%s1107_s30 + $0x38] sm:$0xff] (!%p758_p2), %v993_v16 }
  0x43   : > { %311 = vst [vmem:[%s1107_s30 + $0x40] sm:$0xff] %v993_v16  ;;  %312 = vst [vmem:[%s1107_s30 + $0x48] sm:$0xff] %v993_v16 }
  0x44   : > { %313 = vst [vmem:[%s1107_s30 + $0x50] sm:$0xff] %v993_v16  ;;  %314 = vst [vmem:[%s1107_s30 + $0x58] sm:$0xff] %v993_v16 }
  0x45   : > { %315 = vst [vmem:[%s1107_s30 + $0x60] sm:$0xff] %v993_v16  ;;  %316 = vst [vmem:[%s1107_s30 + $0x68] sm:$0xff] %v993_v16 }
  0x46   : > { %317 = vst [vmem:[%s1107_s30 + $0x70] sm:$0xff] %v993_v16  ;;  %318 = vst [vmem:[%s1107_s30 + $0x78] sm:$0xff] %v993_v16 }
  0x47 PF: > { %s319_s20 = sshra.s32 %s974_s22, 7  ;;  %s324_s7 = sand.u32 127, %s974_s22 }
  0x48   : > { %s321_s8 = sadd.s32 %s978_s0, %s319_s20 }
  0x49   : > { %s759_s9 = sshll.u32 %s321_s8, 7 }
  0x4a   : > { %s325_s10 = sadd.s32 %s759_s9, %s324_s7 }
  0x4b   : > { %s326_s11 = sld [smem:[#allocation3 + %s325_s10]] }
  0x51   : > { %p760_p3 = scmp.eq.s32.totalorder %s326_s11, 0 }
  0x52   : > { %s761_s12 = sshll.u32 (!%p760_p3), %s974_s22, 7  ;;  %v914_v17 = vld [vmem:[%s1109_s5] sm:$0xff] (!%p760_p3)   ;;  %v916_v27 = vld [vmem:[%s1109_s5 + $0x8] sm:$0xff] (!%p760_p3)   ;;  %v918_v29 = vld [vmem:[%s1109_s5 + $0x10] sm:$0xff] (!%p760_p3)  }
  0x53   : > { %330 = sbr.rel (%p760_p3) target bundleno = 345 (0x159), region = 81  ;;  %s332_s13 = sshra.s32 (!%p760_p3), %s761_s12, 3  ;;  %v915_v18 = vld [vmem:[%s1109_s5 + $0x20] sm:$0xff] (!%p760_p3)   ;;  %816 = vmatprep.mubr.bf16.mxu0 (!%p760_p3), %v914_v17  ;;  %v917_v28 = vld [vmem:[%s1109_s5 + $0x28] sm:$0xff] (!%p760_p3)   ;;  %v919_v30 = vld [vmem:[%s1109_s5 + $0x30] sm:$0xff] (!%p760_p3)  }
  0x54   : > { %s762_s14 = sshll.u32 (!%p760_p3), %s332_s13, 2  ;;  %824 = vmatprep.mubr.bf16.mxu1 (!%p760_p3), %v915_v18  ;;  %v920_v31 = vld [vmem:[%s1109_s5 + $0x18] sm:$0xff] (!%p760_p3)   ;;  %v354_v33 = vld [vmem:[%s1107_s30 + $0x10] sm:$0xff] (!%p760_p3)  ;;  %v352_v35 = vld [vmem:[%s1107_s30] sm:$0xff] (!%p760_p3) }
  0x55   : > { %s1137_s17 = scalar_lea.vmem (!%p760_p3), %s1244_s2, %s762_s14  ;;  %v921_v32 = vld [vmem:[%s1109_s5 + $0x38] sm:$0xff] (!%p760_p3)   ;;  %v362_v34 = vld [vmem:[%s1107_s30 + $0x50] sm:$0xff] (!%p760_p3)  ;;  %v360_v36 = vld [vmem:[%s1107_s30 + $0x40] sm:$0xff] (!%p760_p3) }
  0x56   : > { %v906_v19 = vld [vmem:[%s1137_s17] sm:$0xff] (!%p760_p3)   ;;  %v907_v20 = vld [vmem:[%s1137_s17 + $0x8] sm:$0xff] (!%p760_p3)   ;;  %v908_v21 = vld [vmem:[%s1137_s17 + $0x10] sm:$0xff] (!%p760_p3)  }
  0x57   : > { %800 = vmatprep.subr.bf16.mxu0 (!%p760_p3), %v906_v19  ;;  %832 = vmatprep.subr.bf16.mxu1 (!%p760_p3), %v906_v19  ;;  %v909_v22 = vld [vmem:[%s1137_s17 + $0x18] sm:$0xff] (!%p760_p3)   ;;  %v910_v23 = vld [vmem:[%s1137_s17 + $0x20] sm:$0xff] (!%p760_p3)   ;;  %v911_v24 = vld [vmem:[%s1137_s17 + $0x28] sm:$0xff] (!%p760_p3)  }
  0x58   : > { %801 = vmatpush3.bf16.msra.mxu0 (!%p760_p3), %v906_v19  ;;  %840 = vmatpush3.bf16.msra.mxu1 (!%p760_p3), %v906_v19  ;;  %v912_v25 = vld [vmem:[%s1137_s17 + $0x30] sm:$0xff] (!%p760_p3)   ;;  %v913_v26 = vld [vmem:[%s1137_s17 + $0x38] sm:$0xff] (!%p760_p3)   ;;  %v353_v45 = vld [vmem:[%s1107_s30 + $0x8] sm:$0xff] (!%p760_p3) }
  0x59   : > { %802 = vmatprep.subr.bf16.mxu0 (!%p760_p3), %v907_v20  ;;  %833 = vmatprep.subr.bf16.mxu1 (!%p760_p3), %v907_v20  ;;  %v355_v39 = vld [vmem:[%s1107_s30 + $0x18] sm:$0xff] (!%p760_p3)  ;;  %v361_v46 = vld [vmem:[%s1107_s30 + $0x48] sm:$0xff] (!%p760_p3)  ;;  %v358_v57 = vld [vmem:[%s1107_s30 + $0x30] sm:$0xff] (!%p760_p3) }
  0x5a   : > { %v363_v40 = vld [vmem:[%s1107_s30 + $0x58] sm:$0xff]  ;;  %v366_v58 = vld [vmem:[%s1107_s30 + $0x70] sm:$0xff]  ;;  %v356_v59 = vld [vmem:[%s1107_s30 + $0x20] sm:$0xff] }
  0x5b   : > { %v364_v60 = vld [vmem:[%s1107_s30 + $0x60] sm:$0xff]  ;;  %v359_v63 = vld [vmem:[%s1107_s30 + $0x38] sm:$0xff]  ;;  %v357_v5 = vld [vmem:[%s1107_s30 + $0x28] sm:$0xff] }
  0x5c   : > { %803 = vmatpush3.bf16.msra.mxu0 %v907_v20  ;;  %841 = vmatpush3.bf16.msra.mxu1 %v907_v20  ;;  %v367_v0 = vld [vmem:[%s1107_s30 + $0x78] sm:$0xff]  ;;  %v365_v6 = vld [vmem:[%s1107_s30 + $0x68] sm:$0xff] }
  0x5d   : > { %804 = vmatprep.subr.bf16.mxu0 %v908_v21  ;;  %834 = vmatprep.subr.bf16.mxu1 %v908_v21 }
  0x60   : > { %805 = vmatpush3.bf16.msra.mxu0 %v908_v21  ;;  %842 = vmatpush3.bf16.msra.mxu1 %v908_v21 }
  0x61   : > { %806 = vmatprep.subr.bf16.mxu0 %v909_v22  ;;  %835 = vmatprep.subr.bf16.mxu1 %v909_v22 }
  0x64   : > { %807 = vmatpush3.bf16.msra.mxu0 %v909_v22  ;;  %843 = vmatpush3.bf16.msra.mxu1 %v909_v22 }
  0x65   : > { %808 = vmatprep.subr.bf16.mxu0 %v910_v23  ;;  %836 = vmatprep.subr.bf16.mxu1 %v910_v23 }
  0x68   : > { %809 = vmatpush3.bf16.msra.mxu0 %v910_v23  ;;  %844 = vmatpush3.bf16.msra.mxu1 %v910_v23 }
  0x69   : > { %810 = vmatprep.subr.bf16.mxu0 %v911_v24  ;;  %837 = vmatprep.subr.bf16.mxu1 %v911_v24 }
  0x6c   : > { %811 = vmatpush3.bf16.msra.mxu0 %v911_v24  ;;  %845 = vmatpush3.bf16.msra.mxu1 %v911_v24 }
  0x6d   : > { %812 = vmatprep.subr.bf16.mxu0 %v912_v25  ;;  %838 = vmatprep.subr.bf16.mxu1 %v912_v25 }
  0x70   : > { %813 = vmatpush3.bf16.msra.mxu0 %v912_v25  ;;  %846 = vmatpush3.bf16.msra.mxu1 %v912_v25 }
  0x71   : > { %814 = vmatprep.subr.bf16.mxu0 %v913_v26  ;;  %839 = vmatprep.subr.bf16.mxu1 %v913_v26 }
  0x74   : > { %815 = vmatpush3.bf16.msra.mxu0 %v913_v26  ;;  %847 = vmatpush3.bf16.msra.mxu1 %v913_v26 }
  0x77   : > { %817 = vmatmul.mubr.bf16.vlgmr.msra.gmra.mrb[0].mxu0 %v916_v27  ;;  %825 = vmatmul.mubr.bf16.vlgmr.msra.gmra.mrb[0].mxu1 %v917_v28 }
  0x78   : > { %820 = vmatprep.mubr.bf16.mxu0 %v918_v29  ;;  %828 = vmatprep.mubr.bf16.mxu1 %v919_v30 }
  0x7f   : > { %821 = vmatmul.mubr.bf16.gmra.mrb[4].mxu0 %v920_v31  ;;  %829 = vmatmul.mubr.bf16.gmra.mrb[4].mxu1 %v921_v32 }
 0x14a   : > { %v818_v37 = vpop.f32.mrb[0].mxu0  ;;  %v826_v38 = vpop.f32.mrb[0].mxu1 }
 0x14b   : > { %v579_v41 = vadd.f32 %v818_v37, %v354_v33  ;;  %v587_v42 = vadd.f32 %v826_v38, %v362_v34  ;;  %v514_v43 = vpop.f32.mrb[1].mxu0  ;;  %v546_v44 = vpop.f32.mrb[1].mxu1 }
 0x14c   : > { %v577_v47 = vadd.f32 %v514_v43, %v352_v35  ;;  %v585_v48 = vadd.f32 %v546_v44, %v360_v36  ;;  %v819_v49 = vpop.f32.mrb[2].mxu0  ;;  %v827_v50 = vpop.f32.mrb[2].mxu1 }
 0x14d   : > { %595 = vst [vmem:[%s1107_s30 + $0x10] sm:$0xff] %v579_v41  ;;  %603 = vst [vmem:[%s1107_s30 + $0x50] sm:$0xff] %v587_v42  ;;  %v580_v51 = vadd.f32 %v819_v49, %v355_v39  ;;  %v588_v52 = vadd.f32 %v827_v50, %v363_v40  ;;  %v517_v53 = vpop.f32.mrb[3].mxu0  ;;  %v549_v54 = vpop.f32.mrb[3].mxu1 }
 0x14e   : > { %593 = vst [vmem:[%s1107_s30] sm:$0xff] %v577_v47  ;;  %601 = vst [vmem:[%s1107_s30 + $0x40] sm:$0xff] %v585_v48  ;;  %v578_v55 = vadd.f32 %v517_v53, %v353_v45  ;;  %v586_v56 = vadd.f32 %v549_v54, %v361_v46 }
 0x14f   : > { %596 = vst [vmem:[%s1107_s30 + $0x18] sm:$0xff] %v580_v51  ;;  %604 = vst [vmem:[%s1107_s30 + $0x58] sm:$0xff] %v588_v52 }
 0x150   : > { %594 = vst [vmem:[%s1107_s30 + $0x8] sm:$0xff] %v578_v55  ;;  %602 = vst [vmem:[%s1107_s30 + $0x48] sm:$0xff] %v586_v56 }
 0x152   : > { %v822_v61 = vpop.f32.mrb[4].mxu0  ;;  %v830_v62 = vpop.f32.mrb[4].mxu1 }
 0x153   : > { %v583_v1 = vadd.f32 %v822_v61, %v358_v57  ;;  %v591_v2 = vadd.f32 %v830_v62, %v366_v58  ;;  %v530_v3 = vpop.f32.mrb[5].mxu0  ;;  %v562_v4 = vpop.f32.mrb[5].mxu1 }
 0x154   : > { %v581_v7 = vadd.f32 %v530_v3, %v356_v59  ;;  %v589_v8 = vadd.f32 %v562_v4, %v364_v60  ;;  %v823_v9 = vpop.f32.mrb[6].mxu0  ;;  %v831_v10 = vpop.f32.mrb[6].mxu1 }
 0x155   : > { %599 = vst [vmem:[%s1107_s30 + $0x30] sm:$0xff] %v583_v1  ;;  %607 = vst [vmem:[%s1107_s30 + $0x70] sm:$0xff] %v591_v2  ;;  %v584_v11 = vadd.f32 %v823_v9, %v359_v63  ;;  %v592_v12 = vadd.f32 %v831_v10, %v367_v0  ;;  %v533_v13 = vpop.f32.mrb[7].mxu0  ;;  %v565_v14 = vpop.f32.mrb[7].mxu1 }
 0x156   : > { %597 = vst [vmem:[%s1107_s30 + $0x20] sm:$0xff] %v581_v7  ;;  %605 = vst [vmem:[%s1107_s30 + $0x60] sm:$0xff] %v589_v8  ;;  %v582_v15 = vadd.f32 %v533_v13, %v357_v5  ;;  %v590_v16 = vadd.f32 %v565_v14, %v365_v6 }
 0x157   : > { %600 = vst [vmem:[%s1107_s30 + $0x38] sm:$0xff] %v584_v11  ;;  %608 = vst [vmem:[%s1107_s30 + $0x78] sm:$0xff] %v592_v12 }
 0x158   : > { %598 = vst [vmem:[%s1107_s30 + $0x28] sm:$0xff] %v582_v15  ;;  %606 = vst [vmem:[%s1107_s30 + $0x68] sm:$0xff] %v590_v16 }
 0x159 PF: > { %p779_p4 = scmp.ne.s32.totalorder %s974_s22, 1 }
 0x15a   : > { %v613_v17 = vld [vmem:[%s1107_s30] sm:$0xff] (!%p779_p4)  ;;  %v614_v19 = vld [vmem:[%s1107_s30 + $0x8] sm:$0xff] (!%p779_p4)  ;;  %v615_v22 = vld [vmem:[%s1107_s30 + $0x10] sm:$0xff] (!%p779_p4) }
 0x15b   : > { %612 = sbr.rel (%p779_p4) target bundleno = 358 (0x166), region = 85  ;;  %v780_v18 = vld [vmem:[%s1245_s3] ss:$0 sm:$0xff] (!%p779_p4)  ;;  %v616_v23 = vld [vmem:[%s1107_s30 + $0x18] sm:$0xff] (!%p779_p4)  ;;  %v622_v35 = vld [vmem:[%s1107_s30 + $0x48] sm:$0xff] (!%p779_p4) }
 0x15c   : > { %v636_v20 = vadd.f32 (!%p779_p4), %v780_v18, %v613_v17  ;;  %v637_v21 = vadd.f32 (!%p779_p4), %v780_v18, %v614_v19  ;;  %v638_v25 = vadd.f32 (!%p779_p4), %v780_v18, %v615_v22  ;;  %v639_v26 = vadd.f32 (!%p779_p4), %v780_v18, %v616_v23  ;;  %v619_v29 = vld [vmem:[%s1107_s30 + $0x30] sm:$0xff] (!%p779_p4)  ;;  %v621_v34 = vld [vmem:[%s1107_s30 + $0x40] sm:$0xff] (!%p779_p4)  ;;  %v624_v40 = vld [vmem:[%s1107_s30 + $0x58] sm:$0xff] (!%p779_p4) }
 0x15d   : > { %v617_v24 = vld [vmem:[%s1107_s30 + $0x20] sm:$0xff] (!%p779_p4)  ;;  %v642_v32 = vadd.f32 (!%p779_p4), %v780_v18, %v619_v29  ;;  %v623_v36 = vld [vmem:[%s1107_s30 + $0x50] sm:$0xff] (!%p779_p4)  ;;  %v644_v37 = vadd.f32 (!%p779_p4), %v780_v18, %v621_v34  ;;  %v645_v38 = vadd.f32 (!%p779_p4), %v780_v18, %v622_v35  ;;  %v647_v43 = vadd.f32 (!%p779_p4), %v780_v18, %v624_v40 }
 0x15e   : > { %v640_v27 = vadd.f32 (!%p779_p4), %v780_v18, %v617_v24  ;;  %v620_v30 = vld [vmem:[%s1107_s30 + $0x38] sm:$0xff] (!%p779_p4)  ;;  %652 = vst [vmem:[%s1107_s30] sm:$0xff] (!%p779_p4), %v636_v20  ;;  %653 = vst [vmem:[%s1107_s30 + $0x8] sm:$0xff] (!%p779_p4), %v637_v21  ;;  %v646_v39 = vadd.f32 (!%p779_p4), %v780_v18, %v623_v36  ;;  %v625_v41 = vld [vmem:[%s1107_s30 + $0x60] sm:$0xff] (!%p779_p4) }
 0x15f   : > { %v618_v28 = vld [vmem:[%s1107_s30 + $0x28] sm:$0xff] (!%p779_p4)  ;;  %v643_v33 = vadd.f32 (!%p779_p4), %v780_v18, %v620_v30  ;;  %654 = vst [vmem:[%s1107_s30 + $0x10] sm:$0xff] (!%p779_p4), %v638_v25  ;;  %655 = vst [vmem:[%s1107_s30 + $0x18] sm:$0xff] (!%p779_p4), %v639_v26  ;;  %v648_v44 = vadd.f32 (!%p779_p4), %v780_v18, %v625_v41  ;;  %v627_v46 = vld [vmem:[%s1107_s30 + $0x70] sm:$0xff] (!%p779_p4) }
 0x160   : > { %v641_v31 = vadd.f32 (!%p779_p4), %v780_v18, %v618_v28  ;;  %656 = vst [vmem:[%s1107_s30 + $0x20] sm:$0xff] (!%p779_p4), %v640_v27  ;;  %v626_v42 = vld [vmem:[%s1107_s30 + $0x68] sm:$0xff] (!%p779_p4)  ;;  %658 = vst [vmem:[%s1107_s30 + $0x30] sm:$0xff] (!%p779_p4), %v642_v32  ;;  %v628_v47 = vld [vmem:[%s1107_s30 + $0x78] sm:$0xff] (!%p779_p4)  ;;  %v650_v48 = vadd.f32 (!%p779_p4), %v780_v18, %v627_v46 }
 0x161   : > { %659 = vst [vmem:[%s1107_s30 + $0x38] sm:$0xff] (!%p779_p4), %v643_v33  ;;  %v649_v45 = vadd.f32 (!%p779_p4), %v780_v18, %v626_v42  ;;  %660 = vst [vmem:[%s1107_s30 + $0x40] sm:$0xff] (!%p779_p4), %v644_v37  ;;  %v651_v49 = vadd.f32 (!%p779_p4), %v780_v18, %v628_v47 }
 0x162   : > { %657 = vst [vmem:[%s1107_s30 + $0x28] sm:$0xff] %v641_v31  ;;  %661 = vst [vmem:[%s1107_s30 + $0x48] sm:$0xff] %v645_v38 }
 0x163   : > { %662 = vst [vmem:[%s1107_s30 + $0x50] sm:$0xff] %v646_v39  ;;  %663 = vst [vmem:[%s1107_s30 + $0x58] sm:$0xff] %v647_v43 }
 0x164   : > { %664 = vst [vmem:[%s1107_s30 + $0x60] sm:$0xff] %v648_v44  ;;  %665 = vst [vmem:[%s1107_s30 + $0x68] sm:$0xff] %v649_v45 }
 0x165   : > { %666 = vst [vmem:[%s1107_s30 + $0x70] sm:$0xff] %v650_v48  ;;  %667 = vst [vmem:[%s1107_s30 + $0x78] sm:$0xff] %v651_v49 }
 0x166 PF: > { %s20_s25 = sadd.s32 1, %s990_s25   ;;  %s1247_s20 = smov %s970_s21 }
 0x167   : > { %p17_p5 = scmp.ge.s32.totalorder %s20_s25, 6   ;;  %s1248_s21 = smov %s1073_s6 }
 0x168   : > { %s1249_s22 = smov %s982_s23  ;;  %s1250_s0 = smov %s986_s24 }
 0x169   : > { %s1251_s23 = smov %s1254_s26  ;;  %s1252_s24 = smov %s1258_s27 }
 0x16a   :  { %19 = sbr.rel (!%p17_p5) target bundleno = 19 (0x13), region = 121 }

</bundles_post_ra>
